<compile_context>
chip_gen: v5e
topology: v5e:2x2
jax: 0.10.0
libtpu: 0.0.40
codegen_flags: <defaults>
</compile_context>

<pallas_src>
import functools

import jax
import jax.numpy as jnp
from jax.experimental import pallas as pl
from jax.experimental.pallas import tpu as pltpu


def _round_up(x, m):
    return ((x + m - 1) // m) * m


def _largest_divisor(n, candidates, fallback):
    for c in candidates:
        if c <= n and n % c == 0:
            return c
    return fallback


def _gcn_kernel(w_ref, b_ref, feat_ref, adj_ref, o_ref, acc_ref,
                *, tk, project, feat_resident):
    # w_ref:    [C_in, C_out] f32  (read only at finalize when project=True)
    # b_ref:    [1, C_out]    f32
    # feat_ref: [N_pad, C_aug] f32 (batch-resident) or [tk, C_aug] (K-tiled);
    #           the last column is all-ones so its matmul output is the degree.
    # adj_ref:  [tn, tk]      bf16 (exact 0/1 values)
    # o_ref:    [tn, C_out]
    # acc_ref:  [tn, C_aug]   f32 scratch accumulator
    k = pl.program_id(2)

    @pl.when(k == 0)
    def _init():
        acc_ref[...] = jnp.zeros_like(acc_ref)

    adj = adj_ref[...].astype(jnp.float32)        # exact: adjacency is 0/1
    if feat_resident:
        start = pl.multiple_of(k * tk, 128)
        feat = feat_ref[pl.ds(start, tk), :]      # [tk, C_aug] view of the slab
    else:
        feat = feat_ref[...]                      # [tk, C_aug]

    # [tn, C_aug]; the last column accumulates the row degree "for free" (MXU).
    acc_ref[...] += jnp.dot(adj, feat, preferred_element_type=jnp.float32)

    @pl.when(k == pl.num_programs(2) - 1)
    def _finalize():
        acc = acc_ref[...]
        agg = acc[:, :-1]                         # [tn, C_feat]
        deg = acc[:, -1:]                         # [tn, 1]
        if project:                               # (adj @ x) @ W reorder
            agg = jnp.dot(agg, w_ref[...], preferred_element_type=jnp.float32)
        # Exact reciprocal keeps PyTorch's inf/NaN behavior for zero-degree rows.
        inv_deg = pl.reciprocal(deg, approx=False)
        o_ref[...] = (agg * inv_deg + b_ref[...]).astype(o_ref.dtype)


def gcn_layer(node_feats, adj_matrix, weight, bias):
    """node_feats: [B, N, C_in], adj_matrix: [B, N, N] (0/1, identity added),
    weight: [C_out, C_in] (PyTorch nn.Linear layout), bias: [C_out]."""
    B, N, C_in = node_feats.shape
    C_out = weight.shape[0]
    out_dtype = node_feats.dtype

    w_t = weight.astype(jnp.float32).T            # [C_in, C_out]
    b2d = bias.astype(jnp.float32).reshape(1, C_out)

    # Stream the *narrower* feature matrix through the N^2 aggregation.
    project = C_in <= C_out
    if project:
        feat = node_feats.astype(jnp.float32)                     # [B, N, C_in]
    else:
        # Hoist the projection out of the kernel (single XLA matmul).
        feat = jnp.einsum("bni,io->bno",
                          node_feats.astype(jnp.float32), w_t)    # [B, N, C_out]
    c_feat = feat.shape[-1]
    c_aug = c_feat + 1

    # Ones column -> degree via the MXU; zero-pad N to a multiple of 128 so
    # arbitrary graph sizes keep large, (8,128)-aligned tiles.  Zero rows /
    # columns contribute nothing to acc or deg; padded output rows are sliced.
    feat_aug = jnp.concatenate(
        [feat, jnp.ones((B, N, 1), jnp.float32)], axis=-1)        # [B, N, C_aug]
    n_pad = _round_up(N, 128)
    if n_pad != N:
        feat_aug = jnp.pad(feat_aug, ((0, 0), (0, n_pad - N), (0, 0)))
        adj_matrix = jnp.pad(adj_matrix,
                             ((0, 0), (0, n_pad - N), (0, n_pad - N)))

    # 0/1 adjacency is exactly representable in bf16 -> halves the dominant
    # HBM stream with no accuracy loss (dots accumulate in f32).
    adj_bf16 = adj_matrix.astype(jnp.bfloat16)

    # ---- tile sizing against a generation-safe VMEM budget -----------------
    VMEM_BUDGET = 40 << 20                        # headroom under v7x's 64 MiB
    tn = _largest_divisor(n_pad, (512, 256, 128), 128)
    tk = _largest_divisor(n_pad, (2048, 1024, 512, 256, 128), 128)

    feat_slab_bytes = 2 * n_pad * _round_up(c_aug, 128) * 4
    feat_resident = feat_slab_bytes <= (16 << 20)

    def vmem_estimate(tn_, tk_):
        adj_b = 2 * tn_ * tk_ * 2
        feat_rows = n_pad if feat_resident else tk_
        feat_b = 2 * feat_rows * _round_up(c_aug, 128) * 4
        out_b = 2 * tn_ * _round_up(C_out, 128) * 4
        w_b = 2 * _round_up(C_in, 8) * _round_up(C_out, 128) * 4
        bias_b = 2 * 8 * _round_up(C_out, 128) * 4
        acc_b = tn_ * _round_up(c_aug, 128) * 4
        return adj_b + feat_b + out_b + w_b + bias_b + acc_b

    while vmem_estimate(tn, tk) > VMEM_BUDGET and (tn > 128 or tk > 128):
        if tk >= tn and tk > 128:
            tk //= 2
        elif tn > 128:
            tn //= 2
        else:
            tk //= 2

    grid = (B, n_pad // tn, n_pad // tk)

    if feat_resident:
        # Resident per-batch slab: DMA'd once per batch, K window sliced
        # in-kernel (avoids re-streaming the same K tiles for every row tile).
        feat_spec = pl.BlockSpec((None, n_pad, c_aug), lambda b, r, k: (b, 0, 0))
    else:
        feat_spec = pl.BlockSpec((None, tk, c_aug), lambda b, r, k: (b, k, 0))

    kernel = functools.partial(_gcn_kernel, tk=tk, project=project,
                               feat_resident=feat_resident)

    out_padded = pl.pallas_call(
        kernel,
        out_shape=jax.ShapeDtypeStruct((B, n_pad, C_out), out_dtype),
        grid_spec=pltpu.PrefetchScalarGridSpec(
            num_scalar_prefetch=0,
            grid=grid,
            in_specs=[
                pl.BlockSpec((C_in, C_out), lambda b, r, k: (0, 0)),     # W^T
                pl.BlockSpec((1, C_out), lambda b, r, k: (0, 0)),        # bias
                feat_spec,                                               # feat+1s
                pl.BlockSpec((None, tn, tk), lambda b, r, k: (b, r, k)),  # adj
            ],
            out_specs=pl.BlockSpec((None, tn, C_out), lambda b, r, k: (b, r, 0)),
            scratch_shapes=[
                pltpu.VMEM((tn, c_aug), jnp.float32),  # accumulator (+deg col)
            ],
        ),
        compiler_params=pltpu.CompilerParams(
            dimension_semantics=("parallel", "parallel", "arbitrary"),
            vmem_limit_bytes=48 << 20,
        ),
    )(w_t, b2d, feat_aug, adj_bf16)

    return out_padded[:, :N, :]


def _reference(node_feats, adj, weight, bias):
    h = node_feats @ weight.T + bias
    out = jnp.einsum("bij,bjk->bik", adj, h)
    return out / jnp.sum(adj, axis=-1, keepdims=True)


if __name__ == "__main__":
    key = jax.random.PRNGKey(0)

    def make_case(key, B, N, C_in, C_out):
        k_x, k_adj, k_w, k_b = jax.random.split(key, 4)
        x = jax.random.normal(k_x, (B, N, C_in), dtype=jnp.float32)
        adj = (jax.random.uniform(k_adj, (B, N, N)) > 0.5).astype(jnp.float32)
        adj = jnp.maximum(adj, jnp.eye(N, dtype=jnp.float32)[None, :, :])
        bound = 1.0 / (C_in ** 0.5)
        w = jax.random.uniform(k_w, (C_out, C_in), minval=-bound, maxval=bound,
                               dtype=jnp.float32)
        b = jax.random.uniform(k_b, (C_out,), minval=-bound, maxval=bound,
                               dtype=jnp.float32)
        return x, adj, w, b

    k1, k2 = jax.random.split(key)

    # Case 1: C_in <= C_out  (in-kernel projection at finalize).
    x, adj, w, b = make_case(k1, B=2, N=8, C_in=4, C_out=32)
    out = jax.block_until_ready(gcn_layer(x, adj, w, b))
    ref = _reference(x, adj, w, b)
    assert out.shape == ref.shape
    assert jnp.allclose(out, ref, atol=1e-4, rtol=1e-4)

    # Case 2: C_in > C_out, N not a multiple of 128 (hoisted projection +
    # zero-padding path).
    x, adj, w, b = make_case(k2, B=2, N=50, C_in=32, C_out=4)
    out = jax.block_until_ready(gcn_layer(x, adj, w, b))
    ref = _reference(x, adj, w, b)
    assert out.shape == ref.shape
    assert jnp.allclose(out, ref, atol=1e-4, rtol=1e-4)

    print("KERNEL_OK")
</pallas_src>

<mosaic_0001>
module attributes {stable_mosaic.version = 11 : i64} {
  func.func @_gcn_kernel(%arg0: i32, %arg1: i32, %arg2: i32, %arg3: memref<4x32xf32, #tpu.memory_space<vmem>>, %arg4: memref<1x32xf32, #tpu.memory_space<vmem>>, %arg5: memref<1x128x5xf32, #tpu.memory_space<vmem>>, %arg6: memref<1x128x128xbf16, #tpu.memory_space<vmem>>, %arg7: memref<1x128x32xf32, #tpu.memory_space<vmem>>, %arg8: memref<128x5xf32, #tpu.memory_space<vmem>>) attributes {dimension_semantics = [#tpu.dimension_semantics<parallel>, #tpu.dimension_semantics<parallel>, #tpu.dimension_semantics<arbitrary>], iteration_bounds = array<i64: 2, 1, 1>, scalar_prefetch = 0 : i64, scratch_operands = 1 : i64, tpu.core_type = #tpu.core_type<tc>, window_params = [{pipeline_mode = #tpu.pipeline_mode<synchronous>, transform_indices = @transform_0, window_bounds = array<i64: 4, 32>}, {pipeline_mode = #tpu.pipeline_mode<synchronous>, transform_indices = @transform_1, window_bounds = array<i64: 1, 32>}, {transform_indices = @transform_2, window_bounds = array<i64: 1, 128, 5>}, {transform_indices = @transform_3, window_bounds = array<i64: 1, 128, 128>}, {transform_indices = @transform_4, window_bounds = array<i64: 1, 128, 32>}]} {
    %c0_i32 = arith.constant 0 : i32
    %0 = arith.cmpi eq, %arg2, %c0_i32 : i32
    %1 = arith.extui %0 : i1 to i32
    %c0_i32_0 = arith.constant 0 : i32
    %2 = arith.cmpi ne, %1, %c0_i32_0 : i32
    scf.if %2 {
      %cst_11 = arith.constant 0.000000e+00 : f32
      %18 = vector.broadcast %cst_11 : f32 to vector<128x5xf32>
      %c0_12 = arith.constant 0 : index
      %c0_13 = arith.constant 0 : index
      %19 = vector.load %arg8[%c0_12, %c0_13] : memref<128x5xf32, #tpu.memory_space<vmem>>, vector<128x5xf32>
      tpu.vector_store %arg8[%c0_12, %c0_13], %18 {strides = array<i32>} : memref<128x5xf32, #tpu.memory_space<vmem>>, vector<128x5xf32>,
    } else {
    }
    %c0 = arith.constant 0 : index
    %c0_1 = arith.constant 0 : index
    %c0_2 = arith.constant 0 : index
    %3 = vector.load %arg6[%c0, %c0_1, %c0_2] : memref<1x128x128xbf16, #tpu.memory_space<vmem>>, vector<1x128x128xbf16>
    %4 = vector.shape_cast %3 : vector<1x128x128xbf16> to vector<128x128xbf16>
    %5 = arith.extf %4 : vector<128x128xbf16> to vector<128x128xf32>
    %c128_i32 = arith.constant 128 : i32
    %6 = arith.muli %arg2, %c128_i32 : i32
    %7 = tpu.assume_multiple %6, 128 : i32
    %c0_3 = arith.constant 0 : index
    %8 = arith.index_cast %7 : i32 to index
    %c0_4 = arith.constant 0 : index
    %9 = vector.load %arg5[%c0_3, %8, %c0_4] : memref<1x128x5xf32, #tpu.memory_space<vmem>>, vector<1x128x5xf32>
    %10 = vector.shape_cast %9 : vector<1x128x5xf32> to vector<128x5xf32>
    %c0_5 = arith.constant 0 : index
    %c0_6 = arith.constant 0 : index
    %11 = vector.load %arg8[%c0_5, %c0_6] : memref<128x5xf32, #tpu.memory_space<vmem>>, vector<128x5xf32>
    %cst = arith.constant dense<0.000000e+00> : vector<128x5xf32>
    %12 = tpu.matmul %5, %10, %cst {dimension_numbers = #tpu.dot_dimension_numbers<[1], [0], [0], [1], [0, 0, 1, 1], [], []>} : vector<128x128xf32>, vector<128x5xf32>, vector<128x5xf32> -> vector<128x5xf32>
    %13 = arith.addf %11, %12 : vector<128x5xf32>
    %c0_7 = arith.constant 0 : index
    %c0_8 = arith.constant 0 : index
    %14 = vector.load %arg8[%c0_7, %c0_8] : memref<128x5xf32, #tpu.memory_space<vmem>>, vector<128x5xf32>
    tpu.vector_store %arg8[%c0_7, %c0_8], %13 {strides = array<i32>} : memref<128x5xf32, #tpu.memory_space<vmem>>, vector<128x5xf32>,
    %c0_i32_9 = arith.constant 0 : i32
    %15 = arith.cmpi eq, %arg2, %c0_i32_9 : i32
    %16 = arith.extui %15 : i1 to i32
    %c0_i32_10 = arith.constant 0 : i32
    %17 = arith.cmpi ne, %16, %c0_i32_10 : i32
    scf.if %17 {
      %c0_11 = arith.constant 0 : index
      %c0_12 = arith.constant 0 : index
      %18 = vector.load %arg8[%c0_11, %c0_12] : memref<128x5xf32, #tpu.memory_space<vmem>>, vector<128x5xf32>
      %19 = vector.extract_strided_slice %18 {offsets = [0, 0], sizes = [128, 4], strides = [1, 1]} : vector<128x5xf32> to vector<128x4xf32>
      %20 = vector.extract_strided_slice %18 {offsets = [0, 4], sizes = [128, 1], strides = [1, 1]} : vector<128x5xf32> to vector<128x1xf32>
      %c0_13 = arith.constant 0 : index
      %c0_14 = arith.constant 0 : index
      %21 = vector.load %arg3[%c0_13, %c0_14] : memref<4x32xf32, #tpu.memory_space<vmem>>, vector<4x32xf32>
      %cst_15 = arith.constant dense<0.000000e+00> : vector<128x32xf32>
      %22 = tpu.matmul %19, %21, %cst_15 {dimension_numbers = #tpu.dot_dimension_numbers<[1], [0], [0], [1], [0, 0, 1, 1], [], []>} : vector<128x4xf32>, vector<4x32xf32>, vector<128x32xf32> -> vector<128x32xf32>
      %23 = tpu.reciprocal %20 : vector<128x1xf32> -> vector<128x1xf32>
      %24 = vector.broadcast %23 : vector<128x1xf32> to vector<128x32xf32>
      %25 = arith.mulf %22, %24 : vector<128x32xf32>
      %c0_16 = arith.constant 0 : index
      %c0_17 = arith.constant 0 : index
      %26 = vector.load %arg4[%c0_16, %c0_17] : memref<1x32xf32, #tpu.memory_space<vmem>>, vector<1x32xf32>
      %27 = vector.broadcast %26 : vector<1x32xf32> to vector<128x32xf32>
      %28 = arith.addf %25, %27 : vector<128x32xf32>
      %c0_18 = arith.constant 0 : index
      %c0_19 = arith.constant 0 : index
      %c0_20 = arith.constant 0 : index
      %29 = vector.load %arg7[%c0_18, %c0_19, %c0_20] : memref<1x128x32xf32, #tpu.memory_space<vmem>>, vector<1x128x32xf32>
      %30 = vector.shape_cast %29 : vector<1x128x32xf32> to vector<128x32xf32>
      %31 = vector.shape_cast %28 : vector<128x32xf32> to vector<1x128x32xf32>
      tpu.vector_store %arg7[%c0_18, %c0_19, %c0_20], %31 {strides = array<i32>} : memref<1x128x32xf32, #tpu.memory_space<vmem>>, vector<1x128x32xf32>,
    } else {
    }
    return
  }
  func.func @transform_0(%arg0: i32, %arg1: i32, %arg2: i32) -> (i32, i32) {
    %c0_i32 = arith.constant 0 : i32
    %c0_i32_0 = arith.constant 0 : i32
    %c0_i32_1 = arith.constant 0 : i32
    return %c0_i32, %c0_i32_0 : i32, i32
  }
  func.func @transform_1(%arg0: i32, %arg1: i32, %arg2: i32) -> (i32, i32) {
    %c0_i32 = arith.constant 0 : i32
    %c0_i32_0 = arith.constant 0 : i32
    %c0_i32_1 = arith.constant 0 : i32
    return %c0_i32, %c0_i32_0 : i32, i32
  }
  func.func @transform_2(%arg0: i32, %arg1: i32, %arg2: i32) -> (i32, i32, i32) {
    %c0_i32 = arith.constant 0 : i32
    %c0_i32_0 = arith.constant 0 : i32
    %c0_i32_1 = arith.constant 0 : i32
    return %arg0, %c0_i32, %c0_i32_0 : i32, i32, i32
  }
  func.func @transform_3(%arg0: i32, %arg1: i32, %arg2: i32) -> (i32, i32, i32) {
    %c0_i32 = arith.constant 0 : i32
    return %arg0, %arg1, %arg2 : i32, i32, i32
  }
  func.func @transform_4(%arg0: i32, %arg1: i32, %arg2: i32) -> (i32, i32, i32) {
    %c0_i32 = arith.constant 0 : i32
    %c0_i32_0 = arith.constant 0 : i32
    return %arg0, %arg1, %c0_i32 : i32, i32, i32
  }
}

</mosaic_0001>

<bundles_post_ra>
// kernel: tpu_custom_call.1
= control target key start
LH: loop header
LB: loop body
LE: loop exit
PB: predicated region body
PF: predicated region fallthrough
CT: control target
= control target key end

     0   :  { %s1280_s15 = smov 0   ;;  %s1282_s16 = smov 0   ;;  %s1683_s0 = inlined_call_operand.vmem [shape: f32[4,32], index: 0, kind: input, shape index: {}]   ;;  %s1684_s1 = inlined_call_operand.vmem [shape: f32[1,32], index: 1, kind: input, shape index: {}]   ;;  %s1685_s2 = inlined_call_operand.vmem [shape: f32[2,128,5], index: 2, kind: input, shape index: {}]   ;;  %s1686_s3 = inlined_call_operand.vmem [shape: bf16[2,128,128], index: 3, kind: input, shape index: {}]   ;;  %s1687_s4 = inlined_call_operand.vmem [shape: f32[2,128,32], index: 4, kind: output, shape index: {}]  }
   0x1   :  { %s1284_s17 = smov 0  }
   0x2 LB: > { %s33_s18 = sadd.s32 1, %s1247_s16  ;;  %p1066_p0 = scmp.ge.s32.totalorder %s1251_s17, 1  ;;  %s1251_s17 = sphi %s1284_s17, %s14_s17   ;;  %s1247_s16 = sphi %s1282_s16, %s1705_s16   ;;  %s1243_s15 = sphi %s1280_s15, %s1704_s15  }
   0x3   : > { %p35_p1 = scmp.ge.s32.totalorder %s33_s18, 2  ;;  %p205_p2 = scmp.lt.s32.totalorder %s1251_s17, 3 }
   0x5   : > { %s1707_s18 = smov (%p35_p1, %s33_s18), 0  ;;  %p206_p3 = pnand %p1066_p0, %p205_p2 }
   0x6   : > { %p247_p4 = scmp.lt.s32.totalorder (!%p206_p3), %s1243_s15, 1 }
   0x7   : > { %209 = sbr.rel (%p206_p3) target bundleno = 386 (0x182), region = 36 }
   0xc   : > { %s1709_s15 = smov (!%p247_p4, %s1243_s15), 1  ;;  %vm279_vm0 = vcmask 39936   ;;  %v1253_v32 = vmov 0.0   ;;  %v479_v41 = vld [vmem:[%s1683_s0] sm:$0xf]  ;;  %vm529_vm1 = vcmask 1043456  }
   0xd   : > { %s1092_s19 = sshll.u32 %s1709_s15, 7  ;;  %s1093_s23 = sshll.u32 %s1709_s15, 6  ;;  %280 = vst.msk [vmem:[#allocation2] sm:$0xff] %vm279_vm0, %v1253_v32  ;;  %1073 = vmatpush.msk.msra.mxu1 %vm529_vm1, %v479_v41  ;;  %v1254_v42 = vmov 4   ;;  %vm480_vm2 = vcmask 31744  }
   0xe   : > { %s1306_s22 = scalar_lea.vmem %s1685_s2, %s1092_s19  ;;  %s1325_s26 = scalar_lea.vmem %s1686_s3, %s1093_s23  ;;  %281 = vst.msk [vmem:[#allocation2 + $0x8] sm:$0xff] %vm279_vm0, %v1253_v32  ;;  %1193 = vset.pattern.permute.xlu0 %v1254_v42  ;;  %1194 = vset.pattern.permute.xlu2 %v1254_v42 }
   0xf   : > { %v345_v0 = vld [vmem:[%s1306_s22 + $0x78] sm:$0xff]  ;;  %v344_v1 = vld [vmem:[%s1306_s22 + $0x70] sm:$0xff]  ;;  %v343_v2 = vld [vmem:[%s1306_s22 + $0x68] sm:$0xff]  ;;  %282 = vst.msk [vmem:[#allocation2 + $0x10] sm:$0xff] %vm279_vm0, %v1253_v32  ;;  %1195 = vset.pattern.permute.xlu1 %v1254_v42  ;;  %s1624_s7 = scalar_lea.vmem %s1687_s4, %s1092_s19 }
  0x10   : > { %362 = vmatpush.msra.mxu0 %v345_v0  ;;  %1134 = vmatpush.msra.mxu2 %v345_v0  ;;  %v342_v3 = vld [vmem:[%s1306_s22 + $0x60] sm:$0xff]  ;;  %v341_v4 = vld [vmem:[%s1306_s22 + $0x58] sm:$0xff]  ;;  %v340_v5 = vld [vmem:[%s1306_s22 + $0x50] sm:$0xff]  ;;  %283 = vst.msk [vmem:[#allocation2 + $0x18] sm:$0xff] %vm279_vm0, %v1253_v32 }
  0x11   : > { %1135 = vmatpush.msra.mxu3 %v345_v0  ;;  %v339_v6 = vld [vmem:[%s1306_s22 + $0x48] sm:$0xff]  ;;  %v338_v7 = vld [vmem:[%s1306_s22 + $0x40] sm:$0xff]  ;;  %v337_v8 = vld [vmem:[%s1306_s22 + $0x38] sm:$0xff]  ;;  %284 = vst.msk [vmem:[#allocation2 + $0x20] sm:$0xff] %vm279_vm0, %v1253_v32 }
  0x12   : > { %363 = vmatpush.msra.mxu0 %v344_v1  ;;  %1136 = vmatpush.msra.mxu2 %v344_v1  ;;  %v336_v9 = vld [vmem:[%s1306_s22 + $0x30] sm:$0xff]  ;;  %v335_v10 = vld [vmem:[%s1306_s22 + $0x28] sm:$0xff]  ;;  %v334_v11 = vld [vmem:[%s1306_s22 + $0x20] sm:$0xff]  ;;  %285 = vst.msk [vmem:[#allocation2 + $0x28] sm:$0xff] %vm279_vm0, %v1253_v32 }
  0x13   : > { %1137 = vmatpush.msra.mxu3 %v344_v1  ;;  %v333_v12 = vld [vmem:[%s1306_s22 + $0x18] sm:$0xff]  ;;  %v332_v13 = vld [vmem:[%s1306_s22 + $0x10] sm:$0xff]  ;;  %v1096_v14 = vld [vmem:[%s1325_s26] sm:$0xff]   ;;  %286 = vst.msk [vmem:[#allocation2 + $0x30] sm:$0xff] %vm279_vm0, %v1253_v32 }
  0x14   : > { %364 = vmatpush.msra.mxu0 %v343_v2  ;;  %1138 = vmatpush.msra.mxu2 %v343_v2  ;;  %v1130_v15 = vld [vmem:[%s1325_s26 + $0x20] sm:$0xff]   ;;  %v331_v16 = vld [vmem:[%s1306_s22 + $0x8] sm:$0xff]  ;;  %v1097_v18 = vunpack.c.l.bf16 %v1096_v14  ;;  %v1098_v20 = vunpack.c.h.bf16 %v1096_v14  ;;  %v1133_v22 = vld [vmem:[%s1325_s26 + $0x38] sm:$0xff]   ;;  %287 = vst.msk [vmem:[#allocation2 + $0x38] sm:$0xff] %vm279_vm0, %v1253_v32 }
  0x15   : > { %1139 = vmatpush.msra.mxu3 %v343_v2  ;;  %v330_v17 = vld [vmem:[%s1306_s22] sm:$0xff]  ;;  %v1113_v19 = vunpack.c.l.bf16 %v1130_v15  ;;  %v1114_v21 = vunpack.c.h.bf16 %v1130_v15  ;;  %v1127_v23 = vld [vmem:[%s1325_s26 + $0x8] sm:$0xff]   ;;  %v1126_v25 = vunpack.c.h.bf16 %v1133_v22  ;;  %v1128_v30 = vld [vmem:[%s1325_s26 + $0x10] sm:$0xff]   ;;  %288 = vst.msk [vmem:[#allocation2 + $0x40] sm:$0xff] %vm279_vm0, %v1253_v32  ;;  %v1125_v39 = vunpack.c.l.bf16 %v1133_v22 }
  0x16   : > { %365 = vmatpush.msra.mxu0 %v342_v3  ;;  %1140 = vmatpush.msra.mxu2 %v342_v3  ;;  %v1131_v24 = vld [vmem:[%s1325_s26 + $0x28] sm:$0xff]   ;;  %v1101_v26 = vunpack.c.l.bf16 %v1127_v23  ;;  %v1102_v28 = vunpack.c.h.bf16 %v1127_v23  ;;  %v1132_v31 = vld [vmem:[%s1325_s26 + $0x30] sm:$0xff]   ;;  %v1105_v33 = vunpack.c.l.bf16 %v1128_v30  ;;  %289 = vst.msk [vmem:[#allocation2 + $0x48] sm:$0xff] %vm279_vm0, %v1253_v32  ;;  %v1106_v35 = vunpack.c.h.bf16 %v1128_v30  ;;  %v1129_v37 = vld [vmem:[%s1325_s26 + $0x18] sm:$0xff]  }
  0x17   : > { %1141 = vmatpush.msra.mxu3 %v342_v3  ;;  %v1117_v27 = vunpack.c.l.bf16 %v1131_v24  ;;  %v1118_v29 = vunpack.c.h.bf16 %v1131_v24  ;;  %v1121_v34 = vunpack.c.l.bf16 %v1132_v31  ;;  %290 = vst.msk [vmem:[#allocation2 + $0x50] sm:$0xff] %vm279_vm0, %v1253_v32  ;;  %v1122_v36 = vunpack.c.h.bf16 %v1132_v31  ;;  %v346_v43 = vld [vmem:[#allocation2] sm:$0xff]  ;;  %v347_v48 = vld [vmem:[#allocation2 + $0x8] sm:$0xff]  ;;  %v348_v55 = vld [vmem:[#allocation2 + $0x10] sm:$0xff] }
  0x18   : > { %366 = vmatpush.msra.mxu0 %v341_v4  ;;  %1142 = vmatpush.msra.mxu2 %v341_v4  ;;  %291 = vst.msk [vmem:[#allocation2 + $0x58] sm:$0xff] %vm279_vm0, %v1253_v32  ;;  %v1109_v38 = vunpack.c.l.bf16 %v1129_v37  ;;  %v1110_v40 = vunpack.c.h.bf16 %v1129_v37  ;;  %v350_v30 = vld [vmem:[#allocation2 + $0x20] sm:$0xff] }
  0x19   : > { %1143 = vmatpush.msra.mxu3 %v341_v4  ;;  %292 = vst.msk [vmem:[#allocation2 + $0x60] sm:$0xff] %vm279_vm0, %v1253_v32 }
  0x1a   : > { %367 = vmatpush.msra.mxu0 %v340_v5  ;;  %1144 = vmatpush.msra.mxu2 %v340_v5  ;;  %293 = vst.msk [vmem:[#allocation2 + $0x68] sm:$0xff] %vm279_vm0, %v1253_v32 }
  0x1b   : > { %1145 = vmatpush.msra.mxu3 %v340_v5  ;;  %294 = vst.msk [vmem:[#allocation2 + $0x70] sm:$0xff] %vm279_vm0, %v1253_v32 }
  0x1c   : > { %368 = vmatpush.msra.mxu0 %v339_v6  ;;  %1146 = vmatpush.msra.mxu2 %v339_v6  ;;  %295 = vst.msk [vmem:[#allocation2 + $0x78] sm:$0xff] %vm279_vm0, %v1253_v32  ;;  %v354_v46 = vld [vmem:[#allocation2 + $0x40] sm:$0xff] }
  0x1d   : > { %1147 = vmatpush.msra.mxu3 %v339_v6  ;;  %v355_v53 = vld [vmem:[#allocation2 + $0x48] sm:$0xff]  ;;  %v349_v6 = vld [vmem:[#allocation2 + $0x18] sm:$0xff] }
  0x1e   : > { %369 = vmatpush.msra.mxu0 %v338_v7  ;;  %1148 = vmatpush.msra.mxu2 %v338_v7  ;;  %v356_v63 = vld [vmem:[#allocation2 + $0x50] sm:$0xff] }
  0x1f   : > { %1149 = vmatpush.msra.mxu3 %v338_v7 }
  0x20   : > { %370 = vmatpush.msra.mxu0 %v337_v8  ;;  %1150 = vmatpush.msra.mxu2 %v337_v8 }
  0x21   : > { %1151 = vmatpush.msra.mxu3 %v337_v8 }
  0x22   : > { %371 = vmatpush.msra.mxu0 %v336_v9  ;;  %1152 = vmatpush.msra.mxu2 %v336_v9 }
  0x23   : > { %1153 = vmatpush.msra.mxu3 %v336_v9  ;;  %v361_v1 = vld [vmem:[#allocation2 + $0x78] sm:$0xff] }
  0x24   : > { %372 = vmatpush.msra.mxu0 %v335_v10  ;;  %1154 = vmatpush.msra.mxu2 %v335_v10 }
  0x25   : > { %1155 = vmatpush.msra.mxu3 %v335_v10 }
  0x26   : > { %373 = vmatpush.msra.mxu0 %v334_v11  ;;  %1156 = vmatpush.msra.mxu2 %v334_v11 }
  0x27   : > { %1157 = vmatpush.msra.mxu3 %v334_v11 }
  0x28   : > { %374 = vmatpush.msra.mxu0 %v333_v12  ;;  %1158 = vmatpush.msra.mxu2 %v333_v12 }
  0x29   : > { %1159 = vmatpush.msra.mxu3 %v333_v12 }
  0x2a   : > { %375 = vmatpush.msra.mxu0 %v332_v13  ;;  %1160 = vmatpush.msra.mxu2 %v332_v13 }
  0x2b   : > { %1161 = vmatpush.msra.mxu3 %v332_v13 }
  0x2c   : > { %376 = vmatpush.msra.mxu0 %v331_v16  ;;  %1162 = vmatpush.msra.mxu2 %v331_v16 }
  0x2d   : > { %1163 = vmatpush.msra.mxu3 %v331_v16 }
  0x2e   : > { %377 = vmatpush.msra.mxu0 %v330_v17  ;;  %1164 = vmatpush.msra.mxu2 %v330_v17 }
  0x2f   : > { %378 = vmatmul.f32.vlgmr.msra.gmra.mxu0 %v1097_v18  ;;  %402 = vmatmul.f32.vlgmr.msra.gmra.mxu2 %v1113_v19 }
  0x30   : > { %1165 = vmatpush.msra.mxu3 %v330_v17 }
  0x31   : > { %423 = vmatmul.f32.vlgmr.msra.gmra.mxu3 %v1126_v25  ;;  %v357_v25 = vld [vmem:[#allocation2 + $0x58] sm:$0xff] }
  0x32   : > { %1166 = vmatpush.msk.msrb.mxu3 %vm529_vm1, %v479_v41 }
  0x37   : > { %381 = vmatmul.f32.gmra.mxu0 %v1098_v20  ;;  %405 = vmatmul.f32.gmra.mxu2 %v1114_v21 }
  0x3f   : > { %384 = vmatmul.f32.gmra.mxu0 %v1101_v26  ;;  %408 = vmatmul.f32.gmra.mxu2 %v1117_v27 }
  0x47   : > { %387 = vmatmul.f32.gmra.mxu0 %v1102_v28  ;;  %411 = vmatmul.f32.gmra.mxu2 %v1118_v29 }
  0x4f   : > { %390 = vmatmul.f32.gmra.mxu0 %v1105_v33  ;;  %414 = vmatmul.f32.gmra.mxu2 %v1121_v34 }
  0x57   : > { %393 = vmatmul.f32.gmra.mxu0 %v1106_v35  ;;  %417 = vmatmul.f32.gmra.mxu2 %v1122_v36 }
  0x5f   : > { %396 = vmatmul.f32.gmra.mxu0 %v1109_v38  ;;  %420 = vmatmul.f32.gmra.mxu2 %v1125_v39 }
  0x67   : > { %399 = vmatmul.f32.gmra.mxu0 %v1110_v40 }
  0xac   : > { %v379_v44 = vpop.f32.mrf.mxu0 }
  0xad   : > { %v427_v45 = vadd.f32 %v379_v44, %v346_v43 }
  0xaf   : > { %444 = vst.msk [vmem:[#allocation2] sm:$0xff] %vm279_vm0, %v427_v45 }
  0xb2   : > { %v403_v47 = vpop.f32.mrf.mxu2 }
  0xb3   : > { %v435_v49 = vadd.f32 %v403_v47, %v354_v46 }
  0xb4   : > { %v382_v50 = vpop.f32.mrf.mxu0  ;;  %v424_v2 = vpop.f32.mrf.mxu3 }
  0xb5   : > { %452 = vst.msk [vmem:[#allocation2 + $0x40] sm:$0xff] %vm279_vm0, %v435_v49  ;;  %v428_v51 = vadd.f32 %v382_v50, %v347_v48  ;;  %v442_v4 = vadd.f32 %v424_v2, %v361_v1 }
  0xb6   : > { %v463_v52 = vld [vmem:[#allocation2] sm:$0xff] }
  0xb7   : > { %445 = vst.msk [vmem:[#allocation2 + $0x8] sm:$0xff] %vm279_vm0, %v428_v51  ;;  %1074 = vmatmul.msk.f32.vlgmr.msra.gmra.mxu1 %vm480_vm2, %v463_v52  ;;  %1197 = vrcp.f32 %v463_v52  ;;  %v609_v3 = vand.u32 2147483648, %v463_v52  ;;  %v607_v8 = vand.u32 2147483647, %v463_v52  ;;  %vm603_vm4 = vweird.f32 %v463_v52  ;;  %v358_v51 = vld [vmem:[#allocation2 + $0x60] sm:$0xff] }
  0xb8   : > { %459 = vst.msk [vmem:[#allocation2 + $0x78] sm:$0xff] %vm279_vm0, %v442_v4 }
  0xb9   : > { %v610_v17 = vor.u32 1.1754944e-38, %v609_v3  ;;  %vm608_vm6 = vcmp.eq.f32.partialorder %v607_v8, 8.507059e+37 }
  0xba   : > { %v406_v54 = vpop.f32.mrf.mxu2 }
  0xbb   : > { %v436_v56 = vadd.f32 %v406_v54, %v355_v53 }
  0xbc   : > { %v385_v57 = vpop.f32.mrf.mxu0  ;;  %v1361_v58 = vld [vmem:[#allocation2 + $0x40] sm:$0xff] }
  0xbd   : > { %v1198_v59 = vpop.eup %1197  ;;  %453 = vst.msk [vmem:[#allocation2 + $0x48] sm:$0xff] %vm279_vm0, %v436_v56  ;;  %v429_v60 = vadd.f32 %v385_v57, %v348_v55  ;;  %1199 = vrcp.f32 %v1361_v58  ;;  %v719_v23 = vand.u32 2147483647, %v1361_v58  ;;  %v721_v24 = vand.u32 2147483648, %v1361_v58 }
  0xbe   : > { %v1365_v61 = vld [vmem:[#allocation2 + $0x8] sm:$0xff]  ;;  %v599_v62 = vmul.f32 %v1198_v59, %v463_v52  ;;  %vm604_vm3 = vweird.f32 %v1198_v59  ;;  %vm715_vm8 = vweird.f32 %v1361_v58 }
  0xbf   : > { %446 = vst.msk [vmem:[#allocation2 + $0x10] sm:$0xff] %vm279_vm0, %v429_v60  ;;  %1075 = vmatmul.msk.f32.gmra.mxu1 %vm480_vm2, %v1365_v61  ;;  %1201 = vrcp.f32 %v1365_v61  ;;  %vm605_vm5 = vmor %vm603_vm4, %vm604_vm3  ;;  %v623_v28 = vand.u32 2147483648, %v1365_v61  ;;  %v621_v33 = vand.u32 2147483647, %v1365_v61  ;;  %vm720_vm11 = vcmp.eq.f32.partialorder %v719_v23, 8.507059e+37 }
  0xc0   : > { %v600_v0 = vsub.f32 1.0, %v599_v62  ;;  %v722_v36 = vor.u32 1.1754944e-38, %v721_v24  ;;  %vm617_vm12 = vweird.f32 %v1365_v61  ;;  %v352_v24 = vld [vmem:[#allocation2 + $0x30] sm:$0xff] }
  0xc1   : > { %v624_v45 = vor.u32 1.1754944e-38, %v623_v28  ;;  %vm622_vm14 = vcmp.eq.f32.partialorder %v621_v33, 8.507059e+37 }
  0xc2   : > { %v409_v5 = vpop.f32.mrf.mxu2  ;;  %v601_v7 = vmul.f32 %v1198_v59, %v600_v0 }
  0xc3   : > { %v1200_v9 = vpop.eup %1199  ;;  %v437_v10 = vadd.f32 %v409_v5, %v356_v63 }
  0xc4   : > { %v388_v11 = vpop.f32.mrf.mxu0  ;;  %v602_v12 = vadd.f32 %v1198_v59, %v601_v7  ;;  %v711_v13 = vmul.f32 %v1200_v9, %v1361_v58  ;;  %v1373_v14 = vld [vmem:[#allocation2 + $0x48] sm:$0xff]  ;;  %vm716_vm7 = vweird.f32 %v1200_v9 }
  0xc5   : > { %v1202_v15 = vpop.eup %1201  ;;  %454 = vst.msk [vmem:[#allocation2 + $0x50] sm:$0xff] %vm279_vm0, %v437_v10  ;;  %v430_v16 = vadd.f32 %v388_v11, %v349_v6  ;;  %1203 = vrcp.f32 %v1373_v14  ;;  %vm717_vm10 = vmor %vm715_vm8, %vm716_vm7  ;;  %vm729_vm1 = vweird.f32 %v1373_v14  ;;  %v733_v54 = vand.u32 2147483647, %v1373_v14 }
  0xc6   : > { %v1377_v18 = vld [vmem:[#allocation2 + $0x10] sm:$0xff]  ;;  %v606_v19 = vsel %vm605_vm5, %v1198_v59, %v602_v12  ;;  %v712_v20 = vsub.f32 1.0, %v711_v13  ;;  %v613_v21 = vmul.f32 %v1202_v15, %v1365_v61  ;;  %vm618_vm9 = vweird.f32 %v1202_v15  ;;  %v351_v59 = vld [vmem:[#allocation2 + $0x28] sm:$0xff] }
  0xc7   : > { %447 = vst.msk [vmem:[#allocation2 + $0x18] sm:$0xff] %vm279_vm0, %v430_v16  ;;  %1076 = vmatmul.msk.f32.gmra.mxu1 %vm480_vm2, %v1377_v18  ;;  %1205 = vrcp.f32 %v1377_v18  ;;  %v611_v22 = vsel %vm608_vm6, %v610_v17, %v606_v19  ;;  %vm619_vm13 = vmor %vm617_vm12, %vm618_vm9  ;;  %v735_v55 = vand.u32 2147483648, %v1373_v14  ;;  %v637_v56 = vand.u32 2147483648, %v1377_v18 }
  0xc8   : > { %824 = vperm.xlu0 %1193, %v611_v22   ;;  %v713_v26 = vmul.f32 %v1200_v9, %v712_v20  ;;  %v614_v27 = vsub.f32 1.0, %v613_v21  ;;  %v635_v62 = vand.u32 2147483647, %v1377_v18  ;;  %vm631_vm5 = vweird.f32 %v1377_v18 }
  0xc9   : > { %v638_v10 = vor.u32 1.1754944e-38, %v637_v56  ;;  %vm734_vm7 = vcmp.eq.f32.partialorder %v733_v54, 8.507059e+37 }
  0xca   : > { %v412_v29 = vpop.f32.mrf.mxu2  ;;  %v714_v31 = vadd.f32 %v1200_v9, %v713_v26  ;;  %v615_v32 = vmul.f32 %v1202_v15, %v614_v27  ;;  %vm636_vm8 = vcmp.eq.f32.partialorder %v635_v62, 8.507059e+37 }
  0xcb   : > { %v1389_v34 = vpop.eup %1203  ;;  %v438_v35 = vadd.f32 %v412_v29, %v357_v25  ;;  %v1455_v29 = vld [vmem:[#allocation2 + $0x78] sm:$0xff] }
  0xcc   : > { %v391_v37 = vpop.f32.mrf.mxu0  ;;  %v1391_v38 = vld [vmem:[#allocation2 + $0x50] sm:$0xff]  ;;  %v718_v39 = vsel %vm717_vm10, %v1200_v9, %v714_v31  ;;  %v616_v40 = vadd.f32 %v1202_v15, %v615_v32  ;;  %v725_v41 = vmul.f32 %v1389_v34, %v1373_v14  ;;  %vm730_vm15 = vweird.f32 %v1389_v34 }
  0xcd   : > { %v1206_v42 = vpop.eup %1205  ;;  %455 = vst.msk [vmem:[#allocation2 + $0x58] sm:$0xff] %vm279_vm0, %v438_v35  ;;  %v431_v43 = vadd.f32 %v391_v37, %v350_v30  ;;  %1084 = vmatmul.msk.f32.vlgmr.msrb.gmra.mxu3 %vm480_vm2, %v1391_v38  ;;  %1207 = vrcp.f32 %v1391_v38  ;;  %v723_v44 = vsel %vm720_vm11, %v722_v36, %v718_v39  ;;  %vm1418_vm4 = vmor %vm729_vm1, %vm730_vm15  ;;  %v736_v9 = vor.u32 1.1754944e-38, %v735_v55 }
  0xce   : > { %864 = vperm.xlu2 %1194, %v723_v44   ;;  %v1401_v46 = vld [vmem:[#allocation2 + $0x18] sm:$0xff]  ;;  %v620_v47 = vsel %vm619_vm13, %v1202_v15, %v616_v40  ;;  %v726_v48 = vsub.f32 1.0, %v725_v41  ;;  %v627_v49 = vmul.f32 %v1206_v42, %v1377_v18  ;;  %vm632_vm3 = vweird.f32 %v1206_v42  ;;  %v359_v18 = vld [vmem:[#allocation2 + $0x68] sm:$0xff] }
  0xcf   : > { %448 = vst.msk [vmem:[#allocation2 + $0x20] sm:$0xff] %vm279_vm0, %v431_v43  ;;  %1077 = vmatmul.msk.f32.gmra.mxu1 %vm480_vm2, %v1401_v46  ;;  %1209 = vrcp.f32 %v1401_v46  ;;  %v625_v50 = vsel %vm622_vm14, %v624_v45, %v620_v47  ;;  %vm633_vm6 = vmor %vm631_vm5, %vm632_vm3  ;;  %v747_v20 = vand.u32 2147483647, %v1391_v38  ;;  %v749_v21 = vand.u32 2147483648, %v1391_v38  ;;  %v360_v45 = vld [vmem:[#allocation2 + $0x70] sm:$0xff] }
  0xd0   : > { %829 = vperm.xlu0 %1193, %v625_v50   ;;  %v727_v52 = vmul.f32 %v1389_v34, %v726_v48  ;;  %v628_v53 = vsub.f32 1.0, %v627_v49  ;;  %vm743_vm10 = vweird.f32 %v1391_v38  ;;  %v649_v35 = vand.u32 2147483647, %v1401_v46 }
  0xd1   : > { %vm748_vm12 = vcmp.eq.f32.partialorder %v747_v20, 8.507059e+37  ;;  %vm645_vm15 = vweird.f32 %v1401_v46 }
  0xd2   : > { %v415_v57 = vpop.f32.mrf.mxu2  ;;  %v728_v60 = vadd.f32 %v1389_v34, %v727_v52  ;;  %v629_v61 = vmul.f32 %v1206_v42, %v628_v53  ;;  %v353_v52 = vld [vmem:[#allocation2 + $0x38] sm:$0xff] }
  0xd3   : > { %v1416_v63 = vpop.eup %1207  ;;  %v439_v0 = vadd.f32 %v415_v57, %v358_v51 }
  0xd4   : > { %v394_v2 = vpop.f32.mrf.mxu0  ;;  %v1422_v3 = vld [vmem:[#allocation2 + $0x58] sm:$0xff]  ;;  %v732_v4 = vsel %vm1418_vm4, %v1389_v34, %v728_v60  ;;  %v630_v5 = vadd.f32 %v1206_v42, %v629_v61  ;;  %v739_v6 = vmul.f32 %v1416_v63, %v1391_v38  ;;  %vm744_vm9 = vweird.f32 %v1416_v63 }
  0xd5   : > { %v1430_v7 = vpop.eup %1209  ;;  %456 = vst.msk [vmem:[#allocation2 + $0x60] sm:$0xff] %vm279_vm0, %v439_v0  ;;  %v432_v8 = vadd.f32 %v394_v2, %v351_v59  ;;  %1085 = vmatmul.msk.f32.gmra.mxu3 %vm480_vm2, %v1422_v3  ;;  %1211 = vrcp.f32 %v1422_v3  ;;  %v737_v15 = vsel %vm734_vm7, %v736_v9, %v732_v4  ;;  %vm1451_vm11 = vmor %vm743_vm10, %vm744_vm9  ;;  %v750_v38 = vor.u32 1.1754944e-38, %v749_v21 }
  0xd6   : > { %v1437_v11 = vld [vmem:[#allocation2 + $0x20] sm:$0xff]  ;;  %v634_v12 = vsel %vm633_vm6, %v1206_v42, %v630_v5  ;;  %v740_v13 = vsub.f32 1.0, %v739_v6  ;;  %v641_v17 = vmul.f32 %v1430_v7, %v1401_v46  ;;  %v763_v41 = vand.u32 2147483648, %v1422_v3 }
  0xd7   : > { %449 = vst.msk [vmem:[#allocation2 + $0x28] sm:$0xff] %vm279_vm0, %v432_v8  ;;  %1078 = vmatmul.msk.f32.gmra.mxu1 %vm480_vm2, %v1437_v11  ;;  %1213 = vrcp.f32 %v1437_v11  ;;  %v639_v16 = vsel %vm636_vm8, %v638_v10, %v634_v12  ;;  %v651_v42 = vand.u32 2147483648, %v1401_v46  ;;  %vm646_vm13 = vweird.f32 %v1430_v7 }
  0xd8   : > { %869 = vperm.xlu0 %1193, %v737_v15   ;;  %834 = vperm.xlu1 %1195, %v639_v16   ;;  %v741_v19 = vmul.f32 %v1416_v63, %v740_v13  ;;  %v642_v22 = vsub.f32 1.0, %v641_v17  ;;  %v761_v48 = vand.u32 2147483647, %v1422_v3  ;;  %vm757_vm1 = vweird.f32 %v1422_v3  ;;  %vm1487_vm3 = vmor %vm645_vm15, %vm646_vm13 }
  0xd9   : > { %vm1491_vm4 = vcmp.eq.f32.partialorder %v649_v35, 8.507059e+37  ;;  %v764_v46 = vor.u32 1.1754944e-38, %v763_v41  ;;  %v652_v60 = vor.u32 1.1754944e-38, %v651_v42  ;;  %vm659_vm7 = vweird.f32 %v1437_v11 }
  0xda   : > { %v418_v23 = vpop.f32.mrf.mxu2  ;;  %v742_v25 = vadd.f32 %v1416_v63, %v741_v19  ;;  %v643_v34 = vmul.f32 %v1430_v7, %v642_v22  ;;  %vm762_vm6 = vcmp.eq.f32.partialorder %v761_v48, 8.507059e+37  ;;  %v663_v8 = vand.u32 2147483647, %v1437_v11 }
  0xdb   : > { %v1212_v26 = vpop.eup %1211  ;;  %v440_v27 = vadd.f32 %v418_v23, %v359_v18  ;;  %v665_v16 = vand.u32 2147483648, %v1437_v11 }
  0xdc   : > { %v397_v30 = vpop.f32.mrf.mxu0  ;;  %v1457_v31 = vld [vmem:[#allocation2 + $0x60] sm:$0xff]  ;;  %v746_v32 = vsel %vm1451_vm11, %v1416_v63, %v742_v25  ;;  %v753_v33 = vmul.f32 %v1212_v26, %v1422_v3  ;;  %vm758_vm14 = vweird.f32 %v1212_v26  ;;  %v644_v49 = vadd.f32 %v1430_v7, %v643_v34 }
  0xdd   : > { %v1465_v36 = vpop.eup %1213  ;;  %457 = vst.msk [vmem:[#allocation2 + $0x68] sm:$0xff] %vm279_vm0, %v440_v27  ;;  %v433_v37 = vadd.f32 %v397_v30, %v352_v24  ;;  %1086 = vmatmul.msk.f32.gmra.mxu3 %vm480_vm2, %v1457_v31  ;;  %1215 = vrcp.f32 %v1457_v31  ;;  %v751_v43 = vsel %vm748_vm12, %v750_v38, %v746_v32  ;;  %vm1495_vm5 = vmor %vm757_vm1, %vm758_vm14  ;;  %v777_v15 = vand.u32 2147483648, %v1457_v31 }
  0xde   : > { %v1471_v39 = vld [vmem:[#allocation2 + $0x28] sm:$0xff]  ;;  %v754_v40 = vsub.f32 1.0, %v753_v33  ;;  %1217 = vrcp.f32 %v1455_v29  ;;  %v655_v44 = vmul.f32 %v1465_v36, %v1437_v11  ;;  %v648_v2 = vsel %vm1487_vm3, %v1430_v7, %v644_v49 }
  0xdf   : > { %450 = vst.msk [vmem:[#allocation2 + $0x30] sm:$0xff] %vm279_vm0, %v433_v37  ;;  %1079 = vmatmul.msk.f32.gmra.mxu1 %vm480_vm2, %v1471_v39  ;;  %1219 = vrcp.f32 %v1471_v39  ;;  %vm660_vm8 = vweird.f32 %v1465_v36  ;;  %v653_v13 = vsel %vm1491_vm4, %v652_v60, %v648_v2  ;;  %v775_v18 = vand.u32 2147483647, %v1457_v31 }
  0xe0   : > { %874 = vperm.xlu1 %1195, %v751_v43   ;;  %v755_v47 = vmul.f32 %v1212_v26, %v754_v40  ;;  %v656_v50 = vsub.f32 1.0, %v655_v44  ;;  %vm771_vm10 = vweird.f32 %v1457_v31  ;;  %v778_v11 = vor.u32 1.1754944e-38, %v777_v15 }
  0xe1   : > { %v666_v25 = vor.u32 1.1754944e-38, %v665_v16  ;;  %vm776_vm12 = vcmp.eq.f32.partialorder %v775_v18, 8.507059e+37  ;;  %vm664_vm13 = vcmp.eq.f32.partialorder %v663_v8, 8.507059e+37  ;;  %v679_v37 = vand.u32 2147483648, %v1471_v39 }
  0xe2   : > { %v421_v51 = vpop.f32.mrf.mxu2  ;;  %v756_v53 = vadd.f32 %v1212_v26, %v755_v47  ;;  %v657_v61 = vmul.f32 %v1465_v36, %v656_v50  ;;  %vm673_vm15 = vweird.f32 %v1471_v39  ;;  %v817_v2 = vand.u32 2147483647, %v1455_v29 }
  0xe3   : > { %v1216_v56 = vpop.eup %1215  ;;  %v441_v57 = vadd.f32 %v421_v51, %v360_v45  ;;  %v680_v48 = vor.u32 1.1754944e-38, %v679_v37 }
  0xe4   : > { %v1500_v62 = vpop.eup %1217  ;;  %v400_v63 = vpop.f32.mrf.mxu0  ;;  %v1502_v0 = vld [vmem:[#allocation2 + $0x68] sm:$0xff]  ;;  %v760_v1 = vsel %vm1495_vm5, %v1212_v26, %v756_v53  ;;  %v767_v3 = vmul.f32 %v1216_v56, %v1457_v31  ;;  %v658_v7 = vadd.f32 %v1465_v36, %v657_v61  ;;  %vm772_vm9 = vweird.f32 %v1216_v56 }
  0xe5   : > { %v1510_v4 = vpop.eup %1219  ;;  %458 = vst.msk [vmem:[#allocation2 + $0x70] sm:$0xff] %vm279_vm0, %v441_v57  ;;  %v434_v5 = vadd.f32 %v400_v63, %v353_v52  ;;  %1087 = vmatmul.msk.f32.gmra.mxu3 %vm480_vm2, %v1502_v0  ;;  %v765_v6 = vsel %vm762_vm6, %v764_v46, %v760_v1  ;;  %v809_v21 = vmul.f32 %v1500_v62, %v1455_v29  ;;  %vm773_vm11 = vmor %vm771_vm10, %vm772_vm9  ;;  %vm813_vm5 = vweird.f32 %v1455_v29 }
  0xe6   : > { %879 = vperm.xlu2 %1194, %v765_v6   ;;  %v1517_v9 = vld [vmem:[#allocation2 + $0x30] sm:$0xff]  ;;  %v768_v10 = vsub.f32 1.0, %v767_v3  ;;  %v669_v12 = vmul.f32 %v1510_v4, %v1471_v39  ;;  %vm674_vm14 = vweird.f32 %v1510_v4  ;;  %vm814_vm6 = vweird.f32 %v1500_v62 }
  0xe7   : > { %451 = vst.msk [vmem:[#allocation2 + $0x38] sm:$0xff] %vm279_vm0, %v434_v5  ;;  %1080 = vmatmul.msk.f32.gmra.mxu1 %vm480_vm2, %v1517_v9  ;;  %1221 = vrcp.f32 %v1517_v9  ;;  %vm1534_vm0 = vmor %vm659_vm7, %vm660_vm8  ;;  %v810_v32 = vsub.f32 1.0, %v809_v21  ;;  %v693_v42 = vand.u32 2147483648, %v1517_v9  ;;  %v691_v47 = vand.u32 2147483647, %v1517_v9 }
  0xe8   : > { %839 = vperm.xlu1 %1195, %v653_v13   ;;  %v769_v17 = vmul.f32 %v1216_v56, %v768_v10  ;;  %v670_v19 = vsub.f32 1.0, %v669_v12  ;;  %v662_v23 = vsel %vm1534_vm0, %v1465_v36, %v658_v7  ;;  %1223 = vrcp.f32 %v1502_v0  ;;  %vm1564_vm1 = vmor %vm673_vm15, %vm674_vm14 }
  0xe9   : > { %v667_v31 = vsel %vm664_vm13, %v666_v25, %v662_v23  ;;  %v677_v36 = vand.u32 2147483647, %v1471_v39  ;;  %v811_v43 = vmul.f32 %v1500_v62, %v810_v32  ;;  %vm687_vm7 = vweird.f32 %v1517_v9  ;;  %vm1588_vm0 = vmor %vm813_vm5, %vm814_vm6  ;;  %v1617_v25 = vld [vmem:[%s1684_s1] ss:$0 sm:$0xff] }
  0xea   : > { %v770_v22 = vadd.f32 %v1216_v56, %v769_v17  ;;  %v671_v24 = vmul.f32 %v1510_v4, %v670_v19  ;;  %v694_v54 = vor.u32 1.1754944e-38, %v693_v42  ;;  %vm692_vm9 = vcmp.eq.f32.partialorder %v691_v47, 8.507059e+37 }
  0xeb   : > { %vm678_vm4 = vcmp.eq.f32.partialorder %v677_v36, 8.507059e+37  ;;  %v812_v55 = vadd.f32 %v1500_v62, %v811_v43  ;;  %vm818_vm15 = vcmp.eq.f32.partialorder %v817_v2, 8.507059e+37  ;;  %v791_v21 = vand.u32 2147483648, %v1502_v0 }
  0xec   : > { %v1546_v26 = vld [vmem:[#allocation2 + $0x70] sm:$0xff]  ;;  %v774_v27 = vsel %vm773_vm11, %v1216_v56, %v770_v22  ;;  %v672_v34 = vadd.f32 %v1510_v4, %v671_v24  ;;  %v819_v56 = vand.u32 2147483648, %v1455_v29  ;;  %vm785_vm6 = vweird.f32 %v1502_v0 }
  0xed   : > { %v1222_v28 = vpop.eup %1221  ;;  %1088 = vmatmul.msk.f32.gmra.mxu3 %vm480_vm2, %v1546_v26  ;;  %1225 = vrcp.f32 %v1546_v26  ;;  %v779_v30 = vsel %vm776_vm12, %v778_v11, %v774_v27  ;;  %v803_v63 = vand.u32 2147483647, %v1546_v26  ;;  %v805_v1 = vand.u32 2147483648, %v1546_v26 }
  0xee   : > { %884 = vperm.xlu0 %1193, %v779_v30   ;;  %844 = vperm.xlu2 %1194, %v667_v31   ;;  %v1551_v33 = vld [vmem:[#allocation2 + $0x38] sm:$0xff]  ;;  %v683_v35 = vmul.f32 %v1222_v28, %v1517_v9  ;;  %v1562_v40 = vpop.eup %1223  ;;  %v676_v44 = vsel %vm1564_vm1, %v1510_v4, %v672_v34  ;;  %vm688_vm3 = vweird.f32 %v1222_v28  ;;  %vm799_vm11 = vweird.f32 %v1546_v26 }
  0xef   : > { %1081 = vmatmul.msk.f32.gmra.mxu1 %vm480_vm2, %v1551_v33  ;;  %1227 = vrcp.f32 %v1551_v33  ;;  %v781_v51 = vmul.f32 %v1562_v40, %v1502_v0  ;;  %v681_v53 = vsel %vm678_vm4, %v680_v48, %v676_v44  ;;  %vm689_vm8 = vmor %vm687_vm7, %vm688_vm3  ;;  %v816_v6 = vsel %vm1588_vm0, %v1500_v62, %v812_v55 }
  0xf0   : > { %v684_v38 = vsub.f32 1.0, %v683_v35  ;;  %v705_v10 = vand.u32 2147483647, %v1551_v33  ;;  %vm804_vm14 = vcmp.eq.f32.partialorder %v803_v63, 8.507059e+37  ;;  %v820_v7 = vor.u32 1.1754944e-38, %v819_v56 }
  0xf1   : > { %v782_v5 = vsub.f32 1.0, %v781_v51  ;;  %vm701_vm1 = vweird.f32 %v1551_v33  ;;  %vm786_vm5 = vweird.f32 %v1562_v40  ;;  %v789_v22 = vand.u32 2147483647, %v1502_v0 }
  0xf2   : > { %v685_v45 = vmul.f32 %v1222_v28, %v684_v38  ;;  %vm706_vm4 = vcmp.eq.f32.partialorder %v705_v10, 8.507059e+37  ;;  %v821_v18 = vsel %vm818_vm15, %v820_v7, %v816_v6  ;;  %vm787_vm7 = vmor %vm785_vm6, %vm786_vm5  ;;  %v792_v24 = vor.u32 1.1754944e-38, %v791_v21 }
  0xf3   : > { %v1226_v39 = vpop.eup %1225  ;;  %v783_v15 = vmul.f32 %v1562_v40, %v782_v5 }
  0xf4   : > { %v686_v49 = vadd.f32 %v1222_v28, %v685_v45  ;;  %v795_v50 = vmul.f32 %v1226_v39, %v1546_v26  ;;  %vm800_vm10 = vweird.f32 %v1226_v39 }
  0xf5   : > { %v1228_v52 = vpop.eup %1227  ;;  %1089 = vmatmul.msk.f32.gmra.mxu3 %vm480_vm2, %v1455_v29  ;;  %vm801_vm13 = vmor %vm799_vm11, %vm800_vm10  ;;  %v806_v29 = vor.u32 1.1754944e-38, %v805_v1  ;;  %v784_v20 = vadd.f32 %v1562_v40, %v783_v15 }
  0xf6   : > { %849 = vperm.xlu2 %1194, %v681_v53   ;;  %v690_v57 = vsel %vm689_vm8, %v1222_v28, %v686_v49  ;;  %v796_v59 = vsub.f32 1.0, %v795_v50  ;;  %v697_v60 = vmul.f32 %v1228_v52, %v1551_v33  ;;  %vm702_vm12 = vweird.f32 %v1228_v52 }
  0xf7   : > { %1082 = vmatmul.msk.f32.gmra.mxu1 %vm480_vm2, %v1361_v58  ;;  %v695_v61 = vsel %vm692_vm9, %v694_v54, %v690_v57  ;;  %v707_v58 = vand.u32 2147483648, %v1551_v33  ;;  %vm703_vm3 = vmor %vm701_vm1, %vm702_vm12  ;;  %v788_v23 = vsel %vm787_vm7, %v1562_v40, %v784_v20  ;;  %vm938_vm8 = vcmask 261120  }
  0xf8   : > { %854 = vperm.xlu0 %1193, %v695_v61   ;;  %v797_v3 = vmul.f32 %v1226_v39, %v796_v59  ;;  %v698_v4 = vsub.f32 1.0, %v697_v60 }
  0xf9   : > { %v708_v62 = vor.u32 1.1754944e-38, %v707_v58 }
  0xfa   : > { %v798_v8 = vadd.f32 %v1226_v39, %v797_v3  ;;  %v699_v9 = vmul.f32 %v1228_v52, %v698_v4 }
  0xfc   : > { %v802_v12 = vsel %vm801_vm13, %v1226_v39, %v798_v8  ;;  %v700_v13 = vadd.f32 %v1228_v52, %v699_v9 }
  0xfd   : > { %v807_v16 = vsel %vm804_vm14, %v806_v29, %v802_v12 }
  0xfe   : > { %894 = vperm.xlu2 %1194, %v807_v16   ;;  %v704_v17 = vsel %vm703_vm3, %v1228_v52, %v700_v13 }
  0xff   : > { %1083 = vmatmul.msk.f32.gmra.mxu1 %vm480_vm2, %v1373_v14  ;;  %v709_v19 = vsel %vm706_vm4, %v708_v62, %v704_v17  ;;  %vm790_vm2 = vcmp.eq.f32.partialorder %v789_v22, 8.507059e+37 }
 0x100   : > { %899 = vperm.xlu0 %1193, %v821_v18   ;;  %859 = vperm.xlu1 %1195, %v709_v19   ;;  %v793_v14 = vsel %vm790_vm2, %v792_v24, %v788_v23 }
 0x108   : > { %889 = vperm.xlu1 %1195, %v793_v14  }
 0x128   : > { %v865_v30 = vpop.permute.xlu2 %864 }
 0x134   : > { %v550_v11 = vpop.f32.mrf.mxu1 }
 0x13a   : > { %v825_v26 = vpop.permute.xlu0 %824 }
 0x13b   : > { %v902_v27 = vmul.f32 %v825_v26, %v550_v11 }
 0x13c   : > { %v553_v0 = vpop.f32.mrf.mxu1 }
 0x13d   : > { %v922_v28 = vadd.f32 %v1617_v25, %v902_v27 }
 0x13f   : > { %939 = vst.msk [vmem:[%s1624_s7] sm:$0xff] %vm938_vm8, %v922_v28 }
 0x140   : > { %v880_v35 = vpop.permute.xlu2 %879 }
 0x142   : > { %v830_v31 = vpop.permute.xlu0 %829 }
 0x143   : > { %v903_v32 = vmul.f32 %v830_v31, %v553_v0 }
 0x144   : > { %v556_v33 = vpop.f32.mrf.mxu1 }
 0x145   : > { %v923_v34 = vadd.f32 %v1617_v25, %v903_v32 }
 0x147   : > { %940 = vst.msk [vmem:[%s1624_s7 + $0x8] sm:$0xff] %vm938_vm8, %v923_v34 }
 0x148   : > { %v845_v42 = vpop.permute.xlu2 %844 }
 0x14a   : > { %v835_v36 = vpop.permute.xlu1 %834  ;;  %v870_v49 = vpop.permute.xlu0 %869 }
 0x14b   : > { %v904_v37 = vmul.f32 %v835_v36, %v556_v33 }
 0x14c   : > { %v559_v38 = vpop.f32.mrf.mxu1 }
 0x14d   : > { %v924_v40 = vadd.f32 %v1617_v25, %v904_v37 }
 0x14f   : > { %941 = vst.msk [vmem:[%s1624_s7 + $0x10] sm:$0xff] %vm938_vm8, %v924_v40 }
 0x150   : > { %v580_v41 = vpop.f32.mrf.mxu3  ;;  %v850_v55 = vpop.permute.xlu2 %849 }
 0x152   : > { %v875_v43 = vpop.permute.xlu1 %874 }
 0x153   : > { %v912_v44 = vmul.f32 %v875_v43, %v580_v41 }
 0x154   : > { %v562_v45 = vpop.f32.mrf.mxu1 }
 0x155   : > { %v932_v47 = vadd.f32 %v1617_v25, %v912_v44  ;;  %v906_v39 = vmul.f32 %v845_v42, %v562_v45 }
 0x157   : > { %949 = vst.msk [vmem:[%s1624_s7 + $0x50] sm:$0xff] %vm938_vm8, %v932_v47  ;;  %v926_v48 = vadd.f32 %v1617_v25, %v906_v39 }
 0x158   : > { %v583_v50 = vpop.f32.mrf.mxu3  ;;  %v895_v8 = vpop.permute.xlu2 %894 }
 0x159   : > { %943 = vst.msk [vmem:[%s1624_s7 + $0x20] sm:$0xff] %vm938_vm8, %v926_v48  ;;  %v913_v51 = vmul.f32 %v880_v35, %v583_v50 }
 0x15a   : > { %v840_v52 = vpop.permute.xlu1 %839 }
 0x15b   : > { %v933_v53 = vadd.f32 %v1617_v25, %v913_v51  ;;  %v905_v54 = vmul.f32 %v840_v52, %v559_v38 }
 0x15c   : > { %v565_v56 = vpop.f32.mrf.mxu1 }
 0x15d   : > { %950 = vst.msk [vmem:[%s1624_s7 + $0x58] sm:$0xff] %vm938_vm8, %v933_v53  ;;  %v925_v57 = vadd.f32 %v1617_v25, %v905_v54  ;;  %v907_v59 = vmul.f32 %v850_v55, %v565_v56 }
 0x15f   : > { %942 = vst.msk [vmem:[%s1624_s7 + $0x18] sm:$0xff] %vm938_vm8, %v925_v57  ;;  %v927_v46 = vadd.f32 %v1617_v25, %v907_v59 }
 0x160   : > { %v586_v60 = vpop.f32.mrf.mxu3  ;;  %v885_v61 = vpop.permute.xlu0 %884 }
 0x161   : > { %944 = vst.msk [vmem:[%s1624_s7 + $0x28] sm:$0xff] %vm938_vm8, %v927_v46  ;;  %v914_v63 = vmul.f32 %v885_v61, %v586_v60 }
 0x163   : > { %v934_v1 = vadd.f32 %v1617_v25, %v914_v63 }
 0x164   : > { %v568_v2 = vpop.f32.mrf.mxu1 }
 0x165   : > { %951 = vst.msk [vmem:[%s1624_s7 + $0x60] sm:$0xff] %vm938_vm8, %v934_v1 }
 0x168   : > { %v589_v3 = vpop.f32.mrf.mxu3 }
 0x16a   : > { %v855_v4 = vpop.permute.xlu0 %854 }
 0x16b   : > { %v908_v5 = vmul.f32 %v855_v4, %v568_v2 }
 0x16c   : > { %v571_v6 = vpop.f32.mrf.mxu1 }
 0x16d   : > { %v928_v58 = vadd.f32 %v1617_v25, %v908_v5 }
 0x16f   : > { %945 = vst.msk [vmem:[%s1624_s7 + $0x30] sm:$0xff] %vm938_vm8, %v928_v58 }
 0x170   : > { %v592_v9 = vpop.f32.mrf.mxu3 }
 0x171   : > { %v916_v10 = vmul.f32 %v895_v8, %v592_v9 }
 0x172   : > { %v860_v29 = vpop.permute.xlu1 %859  ;;  %v900_v17 = vpop.permute.xlu0 %899 }
 0x173   : > { %v936_v7 = vadd.f32 %v1617_v25, %v916_v10  ;;  %v909_v12 = vmul.f32 %v860_v29, %v571_v6 }
 0x174   : > { %v574_v13 = vpop.f32.mrf.mxu1 }
 0x175   : > { %953 = vst.msk [vmem:[%s1624_s7 + $0x70] sm:$0xff] %vm938_vm8, %v936_v7  ;;  %v929_v15 = vadd.f32 %v1617_v25, %v909_v12  ;;  %v910_v16 = vmul.f32 %v865_v30, %v574_v13 }
 0x177   : > { %946 = vst.msk [vmem:[%s1624_s7 + $0x38] sm:$0xff] %vm938_vm8, %v929_v15  ;;  %v930_v62 = vadd.f32 %v1617_v25, %v910_v16 }
 0x178   : > { %v595_v18 = vpop.f32.mrf.mxu3 }
 0x179   : > { %947 = vst.msk [vmem:[%s1624_s7 + $0x40] sm:$0xff] %vm938_vm8, %v930_v62  ;;  %v917_v19 = vmul.f32 %v900_v17, %v595_v18 }
 0x17a   : > { %v890_v20 = vpop.permute.xlu1 %889 }
 0x17b   : > { %v937_v21 = vadd.f32 %v1617_v25, %v917_v19  ;;  %v915_v22 = vmul.f32 %v890_v20, %v589_v3 }
 0x17c   : > { %v577_v23 = vpop.f32.mrf.mxu1 }
 0x17d   : > { %954 = vst.msk [vmem:[%s1624_s7 + $0x78] sm:$0xff] %vm938_vm8, %v937_v21  ;;  %v935_v24 = vadd.f32 %v1617_v25, %v915_v22  ;;  %v911_v14 = vmul.f32 %v870_v49, %v577_v23 }
 0x17f   : > { %952 = vst.msk [vmem:[%s1624_s7 + $0x68] sm:$0xff] %vm938_vm8, %v935_v24  ;;  %v931_v11 = vadd.f32 %v1617_v25, %v911_v14 }
 0x181   : > { %948 = vst.msk [vmem:[%s1624_s7 + $0x48] sm:$0xff] %vm938_vm8, %v931_v11 }
 0x182 PF: > { %s14_s17 = sadd.s32 1, %s1251_s17   ;;  %s1704_s15 = smov %s1247_s16 }
 0x183   : > { %p11_p5 = scmp.ge.s32.totalorder %s14_s17, 4   ;;  %s1705_s16 = smov %s1707_s18 }
 0x185   :  { %13 = sbr.rel (!%p11_p5) target bundleno = 2 (0x2), region = 78 }

</bundles_post_ra>
